<compile_context>
chip_gen: v6e
topology: v6e:2x2x1
jax: 0.10.0
libtpu: 0.0.40
codegen_flags: <defaults>
</compile_context>

<pallas_src>
import functools

import jax
import jax.numpy as jnp
from jax.experimental import pallas as pl
from jax.experimental.pallas import tpu as pltpu

K_IN = 784      # input features (streamed unpadded; Mosaic handles K=784)
N_OUT = 10      # logical output classes
N_PAD = 128     # lane-dense output width (zero-padded W3/b3 columns)
H = 16          # hidden width


def _round_up(x: int, m: int) -> int:
    return ((x + m - 1) // m) * m


def _choose_tb(B: int, tb: int) -> int:
    """Batch tile: multiple of 16 (bf16 sublane packing); for big batches aim
    for >= 2 grid steps so v7x's two TensorCores both get work."""
    tb = _round_up(tb, 16)
    if B <= 256:
        return _round_up(B, 16)
    return min(tb, _round_up(pl.cdiv(B, 2), 16))


def mlp_kernel(x_ref, w1_ref, b1_ref, w2_ref, b2_ref, w3_ref, b3_ref, o_ref):
    # x arrives as f32 straight from HBM; cast to bf16 in VMEM (VPU, hidden
    # under the input DMA) so the layer-1 dot runs as a fast bf16 MXU sweep.
    x = x_ref[...].astype(jnp.bfloat16)
    # Layer 1: [TB, 784](bf16) @ [784, 16](bf16) -> f32 acc, bias + sigmoid in f32.
    h1 = jnp.dot(x, w1_ref[...], preferred_element_type=jnp.float32)
    h1 = jax.nn.sigmoid(h1 + b1_ref[...])
    # Layer 2: [TB, 16] @ [16, 16]
    h2 = jnp.dot(h1.astype(jnp.bfloat16), w2_ref[...],
                 preferred_element_type=jnp.float32)
    h2 = jax.nn.sigmoid(h2 + b2_ref[...])
    # Layer 3: [TB, 16] @ [16, 128] (zero-padded beyond column 10) -> lane-dense
    # bf16 store.
    h3 = jnp.dot(h2.astype(jnp.bfloat16), w3_ref[...],
                 preferred_element_type=jnp.float32)
    o_ref[...] = jax.nn.sigmoid(h3 + b3_ref[...]).astype(o_ref.dtype)


@functools.partial(jax.jit, static_argnames=("tb",))
def mnist_model_forward(x, params, *, tb=2048):
    """x: [B, 784] float32. params: dict of transposed ([in, out]) weights / biases."""
    B, K = x.shape
    assert K == K_IN

    TB = _choose_tb(B, tb)
    grid = (pl.cdiv(B, TB),)   # no host-side batch padding; Pallas masks the ragged tail

    # Weights / biases are tiny (~30 KiB); one-time host cast/pad is negligible.
    w1 = params["w1"].astype(jnp.bfloat16)
    b1 = params["b1"].astype(jnp.float32)
    w2 = params["w2"].astype(jnp.bfloat16)
    b2 = params["b2"].astype(jnp.float32)
    w3 = jnp.pad(params["w3"], ((0, 0), (0, N_PAD - N_OUT))).astype(jnp.bfloat16)
    b3 = jnp.pad(params["b3"], ((0, 0), (0, N_PAD - N_OUT))).astype(jnp.float32)

    resident = lambda shape: pl.BlockSpec(shape, lambda i: (0, 0))

    flops = 2 * B * (K_IN * H + H * H + H * N_PAD)
    transcendentals = B * (H + H + N_PAD)
    bytes_accessed = (B * K_IN * 4          # x read (f32, single pass)
                      + B * N_PAD * 2       # out write (bf16)
                      + (K_IN * H + H * H + H * N_PAD) * 2   # weights (bf16)
                      + (H + H + N_PAD) * 4)                 # biases (f32)

    out = pl.pallas_call(
        mlp_kernel,
        out_shape=jax.ShapeDtypeStruct((B, N_PAD), jnp.bfloat16),
        grid=grid,
        in_specs=[
            pl.BlockSpec((TB, K_IN), lambda i: (i, 0)),    # x: streamed per tile (f32)
            resident((K_IN, H)), resident((1, H)),         # layer 1
            resident((H, H)), resident((1, H)),            # layer 2
            resident((H, N_PAD)), resident((1, N_PAD)),    # layer 3 (lane-padded)
        ],
        out_specs=pl.BlockSpec((TB, N_PAD), lambda i: (i, 0)),
        compiler_params=pltpu.CompilerParams(
            dimension_semantics=("parallel",),
            vmem_limit_bytes=48 * 1024 * 1024),
        cost_estimate=pl.CostEstimate(
            flops=flops,
            transcendentals=transcendentals,
            bytes_accessed=bytes_accessed),
    )(x, w1, b1, w2, b2, w3, b3)

    # Drop the 118 padded output lanes; cast back to f32 (tiny B*10 op) to
    # match the PyTorch module's output dtype.
    return out[:, :N_OUT].astype(jnp.float32)


def init_params(key):
    """Mirror the PyTorch module: weights ~ U(-1, 1) (torch.nn.init.uniform_),
    biases keep the default nn.Linear init U(-1/sqrt(fan_in), 1/sqrt(fan_in))."""
    k1, k2, k3, k4, k5, k6 = jax.random.split(key, 6)
    # Stored transposed: [in, out] so each layer is x @ W + b.
    w1 = jax.random.uniform(k1, (K_IN, H), jnp.float32, -1.0, 1.0)
    w2 = jax.random.uniform(k2, (H, H), jnp.float32, -1.0, 1.0)
    w3 = jax.random.uniform(k3, (H, N_OUT), jnp.float32, -1.0, 1.0)
    bound1 = 1.0 / jnp.sqrt(784.0)
    bound2 = 1.0 / jnp.sqrt(16.0)
    bound3 = 1.0 / jnp.sqrt(16.0)
    b1 = jax.random.uniform(k4, (1, H), jnp.float32, -bound1, bound1)
    b2 = jax.random.uniform(k5, (1, H), jnp.float32, -bound2, bound2)
    b3 = jax.random.uniform(k6, (1, N_OUT), jnp.float32, -bound3, bound3)
    return {"w1": w1, "b1": b1, "w2": w2, "b2": b2, "w3": w3, "b3": b3}


def _reference(x, params):
    h = jax.nn.sigmoid(x @ params["w1"] + params["b1"])
    h = jax.nn.sigmoid(h @ params["w2"] + params["b2"])
    return jax.nn.sigmoid(h @ params["w3"] + params["b3"])


if __name__ == "__main__":
    key = jax.random.PRNGKey(0)
    kx, kp, kx2, kx3 = jax.random.split(key, 4)
    params = init_params(kp)

    # Small batch (single grid step, block larger than batch -> masked store).
    B = 8
    x = jax.random.uniform(kx, (B, K_IN), jnp.float32, 0.0, 1.0)  # MNIST-like pixels
    out = jax.block_until_ready(mnist_model_forward(x, params))
    ref = _reference(x, params)
    assert out.shape == (B, N_OUT)
    # bf16 MXU operands + bf16 output -> looser tolerance vs the f32 reference.
    assert jnp.allclose(out, ref, atol=5e-2, rtol=0.0), float(
        jnp.max(jnp.abs(out - ref)))

    # Batch not a multiple of the tile: ragged last block, no host padding.
    B2 = 40
    x2 = jax.random.uniform(kx2, (B2, K_IN), jnp.float32, 0.0, 1.0)
    out2 = jax.block_until_ready(mnist_model_forward(x2, params))
    ref2 = _reference(x2, params)
    assert out2.shape == (B2, N_OUT)
    assert jnp.allclose(out2, ref2, atol=5e-2, rtol=0.0), float(
        jnp.max(jnp.abs(out2 - ref2)))

    # Batch big enough to take the multi-step grid path (>= 2 tiles, ragged tail).
    B3 = 600
    x3 = jax.random.uniform(kx3, (B3, K_IN), jnp.float32, 0.0, 1.0)
    out3 = jax.block_until_ready(mnist_model_forward(x3, params))
    ref3 = _reference(x3, params)
    assert out3.shape == (B3, N_OUT)
    assert jnp.allclose(out3, ref3, atol=5e-2, rtol=0.0), float(
        jnp.max(jnp.abs(out3 - ref3)))

    print("KERNEL_OK")
</pallas_src>

<mosaic_0001>
module attributes {stable_mosaic.version = 11 : i64} {
  func.func @mlp_kernel(%arg0: i32, %arg1: memref<16x784xf32, #tpu.memory_space<vmem>>, %arg2: memref<784x16xbf16, #tpu.memory_space<vmem>>, %arg3: memref<1x16xf32, #tpu.memory_space<vmem>>, %arg4: memref<16x16xbf16, #tpu.memory_space<vmem>>, %arg5: memref<1x16xf32, #tpu.memory_space<vmem>>, %arg6: memref<16x128xbf16, #tpu.memory_space<vmem>>, %arg7: memref<1x128xf32, #tpu.memory_space<vmem>>, %arg8: memref<16x128xbf16, #tpu.memory_space<vmem>>) attributes {dimension_semantics = [#tpu.dimension_semantics<parallel>], iteration_bounds = array<i64: 1>, scalar_prefetch = 0 : i64, scratch_operands = 0 : i64, tpu.core_type = #tpu.core_type<tc>, window_params = [{transform_indices = @transform_0, window_bounds = array<i64: 16, 784>}, {pipeline_mode = #tpu.pipeline_mode<synchronous>, transform_indices = @transform_1, window_bounds = array<i64: 784, 16>}, {pipeline_mode = #tpu.pipeline_mode<synchronous>, transform_indices = @transform_2, window_bounds = array<i64: 1, 16>}, {pipeline_mode = #tpu.pipeline_mode<synchronous>, transform_indices = @transform_3, window_bounds = array<i64: 16, 16>}, {pipeline_mode = #tpu.pipeline_mode<synchronous>, transform_indices = @transform_4, window_bounds = array<i64: 1, 16>}, {pipeline_mode = #tpu.pipeline_mode<synchronous>, transform_indices = @transform_5, window_bounds = array<i64: 16, 128>}, {pipeline_mode = #tpu.pipeline_mode<synchronous>, transform_indices = @transform_6, window_bounds = array<i64: 1, 128>}, {transform_indices = @transform_7, window_bounds = array<i64: 16, 128>}]} {
    %c0 = arith.constant 0 : index
    %c0_0 = arith.constant 0 : index
    %0 = vector.load %arg1[%c0, %c0_0] : memref<16x784xf32, #tpu.memory_space<vmem>>, vector<16x784xf32>
    %1 = arith.truncf %0 : vector<16x784xf32> to vector<16x784xbf16>
    %c0_1 = arith.constant 0 : index
    %c0_2 = arith.constant 0 : index
    %2 = vector.load %arg2[%c0_1, %c0_2] : memref<784x16xbf16, #tpu.memory_space<vmem>>, vector<784x16xbf16>
    %cst = arith.constant dense<0.000000e+00> : vector<16x16xf32>
    %3 = tpu.matmul %1, %2, %cst {dimension_numbers = #tpu.dot_dimension_numbers<[1], [0], [0], [1], [0, 0, 1, 1], [], []>} : vector<16x784xbf16>, vector<784x16xbf16>, vector<16x16xf32> -> vector<16x16xf32>
    %c0_3 = arith.constant 0 : index
    %c0_4 = arith.constant 0 : index
    %4 = vector.load %arg3[%c0_3, %c0_4] : memref<1x16xf32, #tpu.memory_space<vmem>>, vector<1x16xf32>
    %5 = vector.broadcast %4 : vector<1x16xf32> to vector<16x16xf32>
    %6 = arith.addf %3, %5 : vector<16x16xf32>
    %7 = arith.negf %6 : vector<16x16xf32>
    %8 = math.exp %7 : vector<16x16xf32>
    %cst_5 = arith.constant 1.000000e+00 : f32
    %9 = vector.broadcast %cst_5 : f32 to vector<16x16xf32>
    %10 = arith.addf %9, %8 : vector<16x16xf32>
    %11 = arith.divf %9, %10 : vector<16x16xf32>
    %12 = arith.truncf %11 : vector<16x16xf32> to vector<16x16xbf16>
    %c0_6 = arith.constant 0 : index
    %c0_7 = arith.constant 0 : index
    %13 = vector.load %arg4[%c0_6, %c0_7] : memref<16x16xbf16, #tpu.memory_space<vmem>>, vector<16x16xbf16>
    %cst_8 = arith.constant dense<0.000000e+00> : vector<16x16xf32>
    %14 = tpu.matmul %12, %13, %cst_8 {dimension_numbers = #tpu.dot_dimension_numbers<[1], [0], [0], [1], [0, 0, 1, 1], [], []>} : vector<16x16xbf16>, vector<16x16xbf16>, vector<16x16xf32> -> vector<16x16xf32>
    %c0_9 = arith.constant 0 : index
    %c0_10 = arith.constant 0 : index
    %15 = vector.load %arg5[%c0_9, %c0_10] : memref<1x16xf32, #tpu.memory_space<vmem>>, vector<1x16xf32>
    %16 = vector.broadcast %15 : vector<1x16xf32> to vector<16x16xf32>
    %17 = arith.addf %14, %16 : vector<16x16xf32>
    %18 = arith.negf %17 : vector<16x16xf32>
    %19 = math.exp %18 : vector<16x16xf32>
    %cst_11 = arith.constant 1.000000e+00 : f32
    %20 = vector.broadcast %cst_11 : f32 to vector<16x16xf32>
    %21 = arith.addf %20, %19 : vector<16x16xf32>
    %22 = arith.divf %20, %21 : vector<16x16xf32>
    %23 = arith.truncf %22 : vector<16x16xf32> to vector<16x16xbf16>
    %c0_12 = arith.constant 0 : index
    %c0_13 = arith.constant 0 : index
    %24 = vector.load %arg6[%c0_12, %c0_13] : memref<16x128xbf16, #tpu.memory_space<vmem>>, vector<16x128xbf16>
    %cst_14 = arith.constant dense<0.000000e+00> : vector<16x128xf32>
    %25 = tpu.matmul %23, %24, %cst_14 {dimension_numbers = #tpu.dot_dimension_numbers<[1], [0], [0], [1], [0, 0, 1, 1], [], []>} : vector<16x16xbf16>, vector<16x128xbf16>, vector<16x128xf32> -> vector<16x128xf32>
    %c0_15 = arith.constant 0 : index
    %c0_16 = arith.constant 0 : index
    %26 = vector.load %arg7[%c0_15, %c0_16] : memref<1x128xf32, #tpu.memory_space<vmem>>, vector<1x128xf32>
    %27 = vector.broadcast %26 : vector<1x128xf32> to vector<16x128xf32>
    %28 = arith.addf %25, %27 : vector<16x128xf32>
    %29 = arith.negf %28 : vector<16x128xf32>
    %30 = math.exp %29 : vector<16x128xf32>
    %cst_17 = arith.constant 1.000000e+00 : f32
    %31 = vector.broadcast %cst_17 : f32 to vector<16x128xf32>
    %32 = arith.addf %31, %30 : vector<16x128xf32>
    %33 = arith.divf %31, %32 : vector<16x128xf32>
    %34 = arith.truncf %33 : vector<16x128xf32> to vector<16x128xbf16>
    %c0_18 = arith.constant 0 : index
    %c0_19 = arith.constant 0 : index
    %35 = vector.load %arg8[%c0_18, %c0_19] : memref<16x128xbf16, #tpu.memory_space<vmem>>, vector<16x128xbf16>
    tpu.vector_store %arg8[%c0_18, %c0_19], %34 {strides = array<i32>} : memref<16x128xbf16, #tpu.memory_space<vmem>>, vector<16x128xbf16>,
    return
  }
  func.func @transform_0(%arg0: i32) -> (i32, i32) {
    %c0_i32 = arith.constant 0 : i32
    %c0_i32_0 = arith.constant 0 : i32
    return %arg0, %c0_i32 : i32, i32
  }
  func.func @transform_1(%arg0: i32) -> (i32, i32) {
    %c0_i32 = arith.constant 0 : i32
    %c0_i32_0 = arith.constant 0 : i32
    %c0_i32_1 = arith.constant 0 : i32
    return %c0_i32, %c0_i32_0 : i32, i32
  }
  func.func @transform_2(%arg0: i32) -> (i32, i32) {
    %c0_i32 = arith.constant 0 : i32
    %c0_i32_0 = arith.constant 0 : i32
    %c0_i32_1 = arith.constant 0 : i32
    return %c0_i32, %c0_i32_0 : i32, i32
  }
  func.func @transform_3(%arg0: i32) -> (i32, i32) {
    %c0_i32 = arith.constant 0 : i32
    %c0_i32_0 = arith.constant 0 : i32
    %c0_i32_1 = arith.constant 0 : i32
    return %c0_i32, %c0_i32_0 : i32, i32
  }
  func.func @transform_4(%arg0: i32) -> (i32, i32) {
    %c0_i32 = arith.constant 0 : i32
    %c0_i32_0 = arith.constant 0 : i32
    %c0_i32_1 = arith.constant 0 : i32
    return %c0_i32, %c0_i32_0 : i32, i32
  }
  func.func @transform_5(%arg0: i32) -> (i32, i32) {
    %c0_i32 = arith.constant 0 : i32
    %c0_i32_0 = arith.constant 0 : i32
    %c0_i32_1 = arith.constant 0 : i32
    return %c0_i32, %c0_i32_0 : i32, i32
  }
  func.func @transform_6(%arg0: i32) -> (i32, i32) {
    %c0_i32 = arith.constant 0 : i32
    %c0_i32_0 = arith.constant 0 : i32
    %c0_i32_1 = arith.constant 0 : i32
    return %c0_i32, %c0_i32_0 : i32, i32
  }
  func.func @transform_7(%arg0: i32) -> (i32, i32) {
    %c0_i32 = arith.constant 0 : i32
    %c0_i32_0 = arith.constant 0 : i32
    return %arg0, %c0_i32 : i32, i32
  }
}

</mosaic_0001>

<bundles_post_ra>
// kernel: mnist_model_forward.1
= control target key start
LH: loop header
LB: loop body
LE: loop exit
PB: predicated region body
PF: predicated region fallthrough
CT: control target
= control target key end

     0   :  { %v1061_v43 = vmov 0.0   ;;  %vm1062_vm0 = vmmov 0   ;;  %vm447_vm1 = vcmask 130048   ;;  %s1322_s0 = inlined_call_operand.vmem [shape: f32[8,784], index: 0, kind: input, shape index: {}]   ;;  %s1323_s1 = inlined_call_operand.vmem [shape: bf16[784,16], index: 1, kind: input, shape index: {}]   ;;  %s1324_s2 = inlined_call_operand.vmem [shape: f32[1,16], index: 2, kind: input, shape index: {}]   ;;  %s1325_s3 = inlined_call_operand.vmem [shape: bf16[16,16], index: 3, kind: input, shape index: {}]   ;;  %s1326_s4 = inlined_call_operand.vmem [shape: f32[1,16], index: 4, kind: input, shape index: {}]   ;;  %s1327_s5 = inlined_call_operand.vmem [shape: bf16[16,128], index: 5, kind: input, shape index: {}]   ;;  %s1328_s6 = inlined_call_operand.vmem [shape: f32[1,128], index: 6, kind: input, shape index: {}]   ;;  %s1329_s7 = inlined_call_operand.vmem [shape: bf16[8,128], index: 7, kind: output, shape index: {}]  }
   0x1   :  { %v986_v0 = vld [vmem:[%s1323_s1 + $0x78] sm:$0xff]   ;;  %v990_v4 = vld [vmem:[%s1323_s1 + $0x70] sm:$0xff]   ;;  %v994_v8 = vld [vmem:[%s1323_s1 + $0x68] sm:$0xff]  }
   0x2   :  { %v987_v1 = vld [vmem:[%s1323_s1 + $0x38] sm:$0xff]   ;;  %894 = vmatprep.subr.bf16.mxu0 %v986_v0  ;;  %v991_v5 = vld [vmem:[%s1323_s1 + $0x30] sm:$0xff]   ;;  %v995_v9 = vld [vmem:[%s1323_s1 + $0x28] sm:$0xff]  }
   0x3   :  { %v988_v2 = vld [vmem:[%s1323_s1 + $0xf8] sm:$0xff]   ;;  %895 = vmatpush3.bf16.msra.mxu0 %v987_v1  ;;  %v992_v6 = vld [vmem:[%s1323_s1 + $0xf0] sm:$0xff]   ;;  %v996_v10 = vld [vmem:[%s1323_s1 + $0xe8] sm:$0xff]  }
   0x4   :  { %v989_v3 = vld [vmem:[%s1323_s1 + $0xb8] sm:$0xff]   ;;  %916 = vmatprep.subr.bf16.mxu1 %v988_v2  ;;  %896 = vmatprep.subr.bf16.mxu0 %v990_v4  ;;  %v993_v7 = vld [vmem:[%s1323_s1 + $0xb0] sm:$0xff]   ;;  %v997_v11 = vld [vmem:[%s1323_s1 + $0xa8] sm:$0xff]  }
   0x5   :  { %917 = vmatpush3.bf16.msra.mxu1 %v989_v3  ;;  %v998_v12 = vld [vmem:[%s1323_s1 + $0x60] sm:$0xff]   ;;  %v1002_v16 = vld [vmem:[%s1323_s1 + $0x58] sm:$0xff]   ;;  %v1006_v20 = vld [vmem:[%s1323_s1 + $0x50] sm:$0xff]  }
   0x6   :  { %918 = vmatprep.subr.bf16.mxu1 %v992_v6  ;;  %v999_v13 = vld [vmem:[%s1323_s1 + $0x20] sm:$0xff]   ;;  %v1003_v17 = vld [vmem:[%s1323_s1 + $0x18] sm:$0xff]   ;;  %v1007_v21 = vld [vmem:[%s1323_s1 + $0x10] sm:$0xff]  }
   0x7   :  { %897 = vmatpush3.bf16.msra.mxu0 %v991_v5  ;;  %v1000_v14 = vld [vmem:[%s1323_s1 + $0xe0] sm:$0xff]   ;;  %v1004_v18 = vld [vmem:[%s1323_s1 + $0xd8] sm:$0xff]   ;;  %v1008_v22 = vld [vmem:[%s1323_s1 + $0xd0] sm:$0xff]  }
   0x8   :  { %898 = vmatprep.subr.bf16.mxu0 %v994_v8  ;;  %v1001_v15 = vld [vmem:[%s1323_s1 + $0xa0] sm:$0xff]   ;;  %v1005_v19 = vld [vmem:[%s1323_s1 + $0x98] sm:$0xff]   ;;  %v1009_v23 = vld [vmem:[%s1323_s1 + $0x90] sm:$0xff]  }
   0x9   :  { %919 = vmatpush3.bf16.msra.mxu1 %v993_v7  ;;  %v1010_v24 = vld [vmem:[%s1323_s1 + $0x48] sm:$0xff]   ;;  %v1014_v28 = vld [vmem:[%s1323_s1 + $0x40] sm:$0xff]   ;;  %v34_v36 = vld [vmem:[%s1322_s0 + $0x38] sm:$0xff] }
   0xa   :  { %920 = vmatprep.subr.bf16.mxu1 %v996_v10  ;;  %v1011_v25 = vld [vmem:[%s1323_s1 + $0x8] sm:$0xff]   ;;  %v1015_v29 = vld [vmem:[%s1323_s1] sm:$0xff]   ;;  %v1018_v38 = vld [vmem:[%s1323_s1 + $0x178] sm:$0xff]  }
   0xb   :  { %899 = vmatpush3.bf16.msra.mxu0 %v995_v9  ;;  %v1012_v26 = vld [vmem:[%s1323_s1 + $0xc8] sm:$0xff]   ;;  %v1016_v30 = vld [vmem:[%s1323_s1 + $0xc0] sm:$0xff]   ;;  %v30_v39 = vld [vmem:[%s1322_s0 + $0x18] sm:$0xff] }
   0xc   :  { %900 = vmatprep.subr.bf16.mxu0 %v998_v12  ;;  %v1013_v27 = vld [vmem:[%s1323_s1 + $0x88] sm:$0xff]   ;;  %v35_v32 = vld [vmem:[%s1322_s0 + $0x40] sm:$0xff]  ;;  %v37_v40 = vld [vmem:[%s1322_s0 + $0x50] sm:$0xff] }
   0xd   :  { %921 = vmatpush3.bf16.msra.mxu1 %v997_v11  ;;  %v28_v31 = vld [vmem:[%s1322_s0 + $0x8] sm:$0xff]  ;;  %v1017_v34 = vld [vmem:[%s1323_s1 + $0x80] sm:$0xff]   ;;  %v44_v41 = vpack.c.bf16 %v37_v40, %v30_v39  ;;  %v1019_v42 = vld [vmem:[%s1323_s1 + $0x138] sm:$0xff]  }
   0xe   :  { %922 = vmatprep.subr.bf16.mxu1 %v1000_v14  ;;  %v42_v33 = vpack.c.bf16 %v35_v32, %v28_v31  ;;  %v27_v35 = vld [vmem:[%s1322_s0] sm:$0xff]  ;;  %v29_v44 = vld [vmem:[%s1322_s0 + $0x10] sm:$0xff]  ;;  %v36_v45 = vld [vmem:[%s1322_s0 + $0x48] sm:$0xff] }
   0xf   :  { %901 = vmatpush3.bf16.msra.mxu0 %v999_v13  ;;  %v41_v37 = vpack.c.bf16 %v34_v36, %v27_v35  ;;  %524 = vmatprep.mubr.bf16.mxu1 %v44_v41  ;;  %v43_v46 = vpack.c.bf16 %v36_v45, %v29_v44  ;;  %v1020_v47 = vld [vmem:[%s1323_s1 + $0x170] sm:$0xff]   ;;  %v1022_v49 = vld [vmem:[%s1323_s1 + $0x168] sm:$0xff]   ;;  %v1024_v51 = vld [vmem:[%s1323_s1 + $0x160] sm:$0xff]  }
  0x10   :  { %902 = vmatprep.subr.bf16.mxu0 %v1002_v16  ;;  %483 = vmatprep.mubr.bf16.mxu0 %v42_v33  ;;  %v1021_v48 = vld [vmem:[%s1323_s1 + $0x130] sm:$0xff]   ;;  %v1023_v50 = vld [vmem:[%s1323_s1 + $0x128] sm:$0xff]   ;;  %v1025_v52 = vld [vmem:[%s1323_s1 + $0x120] sm:$0xff]  }
  0x11   :  { %923 = vmatpush3.bf16.msra.mxu1 %v1001_v15  ;;  %v1026_v53 = vld [vmem:[%s1323_s1 + $0x158] sm:$0xff]   ;;  %v1028_v55 = vld [vmem:[%s1323_s1 + $0x150] sm:$0xff]   ;;  %v1034_v56 = vld [vmem:[%s1323_s1 + $0x180] sm:$0xff]  }
  0x12   :  { %924 = vmatprep.subr.bf16.mxu1 %v1004_v18  ;;  %v1027_v54 = vld [vmem:[%s1323_s1 + $0x118] sm:$0xff]   ;;  %v32_v57 = vld [vmem:[%s1322_s0 + $0x28] sm:$0xff]  ;;  %v1029_v58 = vld [vmem:[%s1323_s1 + $0x110] sm:$0xff]  }
  0x13   :  { %903 = vmatpush3.bf16.msra.mxu0 %v1003_v17  ;;  %v1030_v59 = vld [vmem:[%s1323_s1 + $0x148] sm:$0xff]   ;;  %v39_v60 = vld [vmem:[%s1322_s0 + $0x60] sm:$0xff]  ;;  %v33_v62 = vld [vmem:[%s1322_s0 + $0x30] sm:$0xff] }
  0x14   :  { %904 = vmatprep.subr.bf16.mxu0 %v1006_v20  ;;  %v46_v61 = vpack.c.bf16 %v39_v60, %v32_v57  ;;  %v40_v63 = vld [vmem:[%s1322_s0 + $0x68] sm:$0xff]  ;;  %v1032_v2 = vld [vmem:[%s1323_s1 + $0x140] sm:$0xff]   ;;  %v38_v5 = vld [vmem:[%s1322_s0 + $0x58] sm:$0xff] }
  0x15   :  { %925 = vmatpush3.bf16.msra.mxu1 %v1005_v19  ;;  %v47_v0 = vpack.c.bf16 %v40_v63, %v33_v62  ;;  %v1031_v1 = vld [vmem:[%s1323_s1 + $0x108] sm:$0xff]   ;;  %v1033_v3 = vld [vmem:[%s1323_s1 + $0x100] sm:$0xff]  }
  0x16   :  { %926 = vmatprep.subr.bf16.mxu1 %v1008_v22  ;;  %v31_v4 = vld [vmem:[%s1322_s0 + $0x20] sm:$0xff] }
  0x17   :  { %905 = vmatpush3.bf16.msra.mxu0 %v1007_v21  ;;  %v45_v6 = vpack.c.bf16 %v38_v5, %v31_v4  ;;  %v1035_v7 = vld [vmem:[%s1325_s3] sm:$0xff]  }
  0x18   :  { %906 = vmatprep.subr.bf16.mxu0 %v1010_v24  ;;  %v822_v20 = vld [vmem:[%s1324_s2] ss:$0 sm:$0xff] }
  0x19   :  { %927 = vmatpush3.bf16.msra.mxu1 %v1009_v23 }
  0x1a   :  { %928 = vmatprep.subr.bf16.mxu1 %v1012_v26 }
  0x1b   :  { %907 = vmatpush3.bf16.msra.mxu0 %v1011_v25 }
  0x1c   :  { %908 = vmatprep.subr.bf16.mxu0 %v1014_v28 }
  0x1d   :  { %929 = vmatpush3.bf16.msra.mxu1 %v1013_v27 }
  0x1e   :  { %930 = vmatprep.subr.bf16.mxu1 %v1016_v30 }
  0x1f   :  { %909 = vmatpush3.bf16.msra.mxu0 %v1015_v29 }
  0x20   :  { %938 = vmatprep.subr.bf16.mxu0 %v1018_v38 }
  0x21   :  { %931 = vmatpush3.bf16.msra.mxu1 %v1017_v34 }
  0x22   :  { %966 = vmatprep.subr.bf16.mxu1 %v1061_v43  ;;  %484 = vmatmul.mubr.bf16.vlgmr.msra.gmra.mxu0 %v41_v37 }
  0x23   :  { %939 = vmatpush3.bf16.msra.mxu0 %v1019_v42  ;;  %565 = vmatprep.mubr.bf16.mxu0 %v46_v61 }
  0x24   :  { %525 = vmatmul.mubr.bf16.vlgmr.msra.gmra.mxu1 %v43_v46  ;;  %940 = vmatprep.subr.bf16.mxu0 %v1020_v47 }
  0x25   :  { %968 = vmatprep.mubr.msk.bf16.mxu1 %vm1062_vm0, %v1061_v43  ;;  %967 = vmatpush3.bf16.msra.mxu1 %v1034_v56 }
  0x26   :  { %972 = vmatprep.subr.bf16.mxu1 %v1061_v43 }
  0x27   :  { %941 = vmatpush3.bf16.msra.mxu0 %v1021_v48 }
  0x28   :  { %942 = vmatprep.subr.bf16.mxu0 %v1022_v49  ;;  %v1036_v49 = vld [vmem:[%s1327_s5] sm:$0xff]  }
  0x2b   :  { %943 = vmatpush3.bf16.msra.mxu0 %v1023_v50  ;;  %v875_v50 = vld [vmem:[%s1326_s4] ss:$0 sm:$0xff] }
  0x2c   :  { %944 = vmatprep.subr.bf16.mxu0 %v1024_v51  ;;  %969 = vmatmul.mubr.msk.bf16.vlgmr.msra.gmra.mxu1 %vm447_vm1, %v47_v0 }
  0x2d   :  { %974 = vmatprep.mubr.msk.bf16.mxu1 %vm1062_vm0, %v1061_v43  ;;  %973 = vmatpush3.bf16.msra.mxu1 %v1035_v7 }
  0x2e   :  { %978 = vmatprep.subr.bf16.mxu1 %v1061_v43 }
  0x2f   :  { %945 = vmatpush3.bf16.msra.mxu0 %v1025_v52 }
  0x30   :  { %946 = vmatprep.subr.bf16.mxu0 %v1026_v53 }
  0x33   :  { %947 = vmatpush3.bf16.msra.mxu0 %v1027_v54 }
  0x34   :  { %948 = vmatprep.subr.bf16.mxu0 %v1028_v55 }
  0x37   :  { %949 = vmatpush3.bf16.msra.mxu0 %v1029_v58 }
  0x38   :  { %950 = vmatprep.subr.bf16.mxu0 %v1030_v59 }
  0x3b   :  { %951 = vmatpush3.bf16.msra.mxu0 %v1031_v1  ;;  %v880_v1 = vld [vmem:[%s1328_s6] ss:$0 sm:$0xff] }
  0x3c   :  { %952 = vmatprep.subr.bf16.mxu0 %v1032_v2 }
  0x3f   :  { %953 = vmatpush3.bf16.msra.mxu0 %v1033_v3 }
  0x42   :  { %566 = vmatmul.mubr.bf16.vlgmr.msra.gmra.mxu0 %v45_v6 }
  0xe2   :  { %v910_v11 = vpop.f32.mrf.mxu0 }
  0xe4   :  { %v932_v8 = vpop.f32.mrf.mxu1  ;;  %v911_v13 = vpop.f32.mrf.mxu0 }
  0xe5   :  { %v912_v19 = vadd.f32 %v911_v13, %v910_v11 }
  0xe6   :  { %v933_v9 = vpop.f32.mrf.mxu1  ;;  %v913_v16 = vpop.f32.mrf.mxu0 }
  0xe7   :  { %v486_v22 = vadd.f32 %v912_v19, %v822_v20  ;;  %v934_v23 = vadd.f32 %v933_v9, %v932_v8 }
  0xe8   :  { %v935_v10 = vpop.f32.mrf.mxu1  ;;  %v914_v21 = vpop.f32.mrf.mxu0 }
  0xe9   :  { %v915_v24 = vadd.f32 %v914_v21, %v913_v16  ;;  %v527_v27 = vadd.f32 %v934_v23, %v486_v22 }
  0xea   :  { %v936_v12 = vpop.f32.mrf.mxu1 }
  0xeb   :  { %v489_v28 = vadd.f32 %v915_v24, %v822_v20  ;;  %v937_v29 = vadd.f32 %v936_v12, %v935_v10 }
  0xec   :  { %v608_v14 = vpop.f32.mrf.mxu1 }
  0xed   :  { %v530_v34 = vadd.f32 %v937_v29, %v489_v28 }
  0xee   :  { %v970_v15 = vpop.f32.mrf.mxu1 }
  0xf0   :  { %v611_v17 = vpop.f32.mrf.mxu1 }
  0xf2   :  { %v971_v18 = vpop.f32.mrf.mxu1 }
 0x102   :  { %v954_v25 = vpop.f32.mrf.mxu0 }
 0x104   :  { %v955_v26 = vpop.f32.mrf.mxu0 }
 0x105   :  { %v956_v30 = vadd.f32 %v955_v26, %v954_v25 }
 0x106   :  { %v957_v31 = vpop.f32.mrf.mxu0 }
 0x107   :  { %v568_v32 = vadd.f32 %v956_v30, %v527_v27 }
 0x108   :  { %v958_v33 = vpop.f32.mrf.mxu0 }
 0x109   :  { %v609_v35 = vadd.f32 %v608_v14, %v568_v32  ;;  %v959_v36 = vadd.f32 %v958_v33, %v957_v31 }
 0x10b   :  { %v873_v37 = vmul.f32 -1.442695, %v609_v35  ;;  %v571_v38 = vadd.f32 %v959_v36, %v530_v34 }
 0x10d   :  { %1037 = vpow2.f32 %v873_v37  ;;  %v612_v39 = vadd.f32 %v611_v17, %v571_v38 }
 0x10f   :  { %v874_v40 = vmul.f32 -1.442695, %v612_v39 }
 0x111   :  { %1039 = vpow2.f32 %v874_v40 }
 0x11a   :  { %v1038_v41 = vpop.eup %1037 }
 0x11b   :  { %v621_v42 = vadd.f32 1.0, %v1038_v41 }
 0x11d   :  { %1041 = vrcp.f32 %v621_v42 }
 0x11e   :  { %v1040_v44 = vpop.eup %1039 }
 0x11f   :  { %v622_v45 = vadd.f32 1.0, %v1040_v44 }
 0x121   :  { %1043 = vrcp.f32 %v622_v45 }
 0x12a   :  { %v1042_v46 = vpop.eup %1041 }
 0x12e   :  { %v1044_v47 = vpop.eup %1043 }
 0x12f   :  { %v627_v48 = vpack.c.bf16 %v1044_v47, %v1042_v46 }
 0x131   :  { %975 = vmatmul.mubr.msk.bf16.vlgmr.msra.gmra.mxu1 %vm447_vm1, %v627_v48 }
 0x132   :  { %980 = vmatprep.mubr.msk.bf16.mxu1 %vm1062_vm0, %v1061_v43  ;;  %979 = vmatpush3.bf16.msra.mxu1 %v1036_v49 }
 0x1f1   :  { %v680_v51 = vpop.f32.mrf.mxu1 }
 0x1f2   :  { %v681_v52 = vadd.f32 %v875_v50, %v680_v51 }
 0x1f3   :  { %v976_v53 = vpop.f32.mrf.mxu1 }
 0x1f4   :  { %v878_v54 = vmul.f32 -1.442695, %v681_v52 }
 0x1f5   :  { %v683_v55 = vpop.f32.mrf.mxu1 }
 0x1f6   :  { %1045 = vpow2.f32 %v878_v54  ;;  %v684_v56 = vadd.f32 %v875_v50, %v683_v55 }
 0x1f7   :  { %v977_v57 = vpop.f32.mrf.mxu1 }
 0x1f8   :  { %v879_v58 = vmul.f32 -1.442695, %v684_v56 }
 0x1fa   :  { %1047 = vpow2.f32 %v879_v58 }
 0x203   :  { %v1046_v43 = vpop.eup %1045 }
 0x204   :  { %v693_v59 = vadd.f32 1.0, %v1046_v43 }
 0x206   :  { %1049 = vrcp.f32 %v693_v59 }
 0x207   :  { %v1048_v60 = vpop.eup %1047 }
 0x208   :  { %v694_v61 = vadd.f32 1.0, %v1048_v60 }
 0x20a   :  { %1051 = vrcp.f32 %v694_v61 }
 0x213   :  { %v1050_v62 = vpop.eup %1049 }
 0x217   :  { %v1052_v63 = vpop.eup %1051 }
 0x218   :  { %v699_v0 = vpack.c.bf16 %v1052_v63, %v1050_v62 }
 0x21a   :  { %981 = vmatmul.mubr.msk.bf16.vlgmr.msra.gmra.mxu1 %vm447_vm1, %v699_v0 }
 0x2da   :  { %v752_v2 = vpop.f32.mrf.mxu1 }
 0x2db   :  { %v753_v3 = vadd.f32 %v880_v1, %v752_v2 }
 0x2dc   :  { %v982_v4 = vpop.f32.mrf.mxu1 }
 0x2dd   :  { %v883_v5 = vmul.f32 -1.442695, %v753_v3 }
 0x2de   :  { %v755_v6 = vpop.f32.mrf.mxu1 }
 0x2df   :  { %1053 = vpow2.f32 %v883_v5  ;;  %v756_v7 = vadd.f32 %v880_v1, %v755_v6 }
 0x2e0   :  { %v983_v8 = vpop.f32.mrf.mxu1 }
 0x2e1   :  { %v884_v9 = vmul.f32 -1.442695, %v756_v7 }
 0x2e3   :  { %1055 = vpow2.f32 %v884_v9 }
 0x2ec   :  { %v1054_v10 = vpop.eup %1053 }
 0x2ed   :  { %v765_v11 = vadd.f32 1.0, %v1054_v10 }
 0x2ef   :  { %1057 = vrcp.f32 %v765_v11 }
 0x2f0   :  { %v1056_v12 = vpop.eup %1055 }
 0x2f1   :  { %v766_v13 = vadd.f32 1.0, %v1056_v12 }
 0x2f3   :  { %1059 = vrcp.f32 %v766_v13 }
 0x2fc   :  { %v1058_v14 = vpop.eup %1057 }
 0x300   :  { %v1060_v15 = vpop.eup %1059 }
 0x301   :  { %v892_v16 = vpack.c.bf16 %v1060_v15, %v1058_v14 }
 0x303   :  { %893 = vst [vmem:[#allocation2] sm:$0xff] %v892_v16  }
 0x30a   :  { %v799_v17 = vld [vmem:[#allocation2] sm:$0xf] }
 0x30b   :  { %800 = vst [vmem:[%s1329_s7] sm:$0xf] %v799_v17 }

</bundles_post_ra>
